<compile_context>
chip_gen: v5e
topology: v5e:2x2
jax: 0.10.0
libtpu: 0.0.40
codegen_flags: <defaults>
</compile_context>

<pallas_src>
import functools

import jax
import jax.numpy as jnp
from jax.experimental import pallas as pl
from jax.experimental.pallas import tpu as pltpu


def _avg_pool_kernel(x_ref, o_ref, acc_ref, *, inv_count, hw, hw_block, mask_tail):
    # x_ref: (row_block, hw_block) tile of the (N*C, H*W) view.
    # o_ref: (row_block, 1) per-row mean; resident across the reduction axis.
    j = pl.program_id(1)

    @pl.when(j == 0)
    def _init():
        acc_ref[...] = jnp.zeros_like(acc_ref)

    x = x_ref[...].astype(jnp.float32)
    if mask_tail:
        # Last spatial block may run past H*W; zero the out-of-range columns
        # (their contents are unspecified, never padded by us in HBM).
        col = j * hw_block + jax.lax.broadcasted_iota(jnp.int32, x.shape, 1)
        x = jnp.where(col < hw, x, 0.0)
    acc_ref[...] += jnp.sum(x, axis=1, keepdims=True)

    @pl.when(j == pl.num_programs(1) - 1)
    def _finalize():
        o_ref[...] = (acc_ref[...] * inv_count).astype(o_ref.dtype)


def feat_avg_pool(x_nchw, *, row_block_max=512, hw_block_max=2048):
    """AdaptiveAvgPool2d((1,1)) + flatten: (N, C, H, W) -> (N, C)."""
    assert x_nchw.ndim == 4, f"Tensor must have 4 dims, got: {x_nchw.ndim}"
    N, C, H, W = x_nchw.shape
    NC, HW = N * C, H * W

    x2 = x_nchw.reshape(NC, HW)  # contiguous view; free reshape, no HBM copy

    # Keep block caps (8,128)-aligned so capped blocks are always legal.
    row_block_max = max(8, (row_block_max // 8) * 8)
    hw_block_max = max(128, (hw_block_max // 128) * 128)

    # Block = full extent when it fits (legal even if not 8/128-aligned),
    # otherwise an aligned cap with a partial (masked) tail block.
    row_block = NC if NC <= row_block_max else row_block_max
    hw_block = HW if HW <= hw_block_max else hw_block_max
    mask_tail = (HW % hw_block) != 0

    grid = (pl.cdiv(NC, row_block), pl.cdiv(HW, hw_block))
    kernel = functools.partial(
        _avg_pool_kernel,
        inv_count=1.0 / float(HW),
        hw=HW,
        hw_block=hw_block,
        mask_tail=mask_tail,
    )

    out = pl.pallas_call(
        kernel,
        out_shape=jax.ShapeDtypeStruct((NC, 1), x_nchw.dtype),
        grid_spec=pltpu.PrefetchScalarGridSpec(
            num_scalar_prefetch=0,
            grid=grid,
            in_specs=[pl.BlockSpec((row_block, hw_block), lambda i, j: (i, j))],
            out_specs=pl.BlockSpec((row_block, 1), lambda i, j: (i, 0)),
            scratch_shapes=[pltpu.VMEM((row_block, 1), jnp.float32)],
        ),
        compiler_params=pltpu.CompilerParams(
            dimension_semantics=("parallel", "arbitrary"),
        ),
    )(x2)

    return out.reshape(N, C)


feat_avg_pool_jit = jax.jit(feat_avg_pool)


if __name__ == "__main__":
    key = jax.random.PRNGKey(0)

    # Primary test: NCHW input like the PyTorch module (batch=2, channels=4, 16x16).
    x = jax.random.normal(key, (2, 4, 16, 16), jnp.float32)
    out = jax.block_until_ready(feat_avg_pool_jit(x))
    assert out.shape == (2, 4), out.shape
    ref = jnp.mean(x, axis=(2, 3))
    assert jnp.allclose(out, ref, atol=1e-5, rtol=1e-5), float(
        jnp.max(jnp.abs(out - ref)))

    # Ragged spatial extent (7x7 = 49, typical CNN head): full-extent blocks,
    # no operand padding, no masking needed.
    x2 = jax.random.normal(jax.random.PRNGKey(1), (2, 3, 7, 7), jnp.float32)
    out2 = jax.block_until_ready(feat_avg_pool(x2))
    assert jnp.allclose(out2, jnp.mean(x2, axis=(2, 3)), atol=1e-5, rtol=1e-5)

    # Force the multi-block reduction + tail-mask path (HW=400, cap=128).
    x3 = jax.random.normal(jax.random.PRNGKey(2), (2, 4, 20, 20), jnp.float32)
    out3 = jax.block_until_ready(feat_avg_pool(x3, hw_block_max=128))
    assert jnp.allclose(out3, jnp.mean(x3, axis=(2, 3)), atol=1e-5, rtol=1e-5)

    print("KERNEL_OK")
</pallas_src>

<mosaic_0001>
module attributes {stable_mosaic.version = 11 : i64} {
  func.func @_avg_pool_kernel(%arg0: i32, %arg1: i32, %arg2: memref<8x256xf32, #tpu.memory_space<vmem>>, %arg3: memref<8x1xf32, #tpu.memory_space<vmem>>, %arg4: memref<8x1xf32, #tpu.memory_space<vmem>>) attributes {dimension_semantics = [#tpu.dimension_semantics<parallel>, #tpu.dimension_semantics<arbitrary>], iteration_bounds = array<i64: 1, 1>, scalar_prefetch = 0 : i64, scratch_operands = 1 : i64, tpu.core_type = #tpu.core_type<tc>, window_params = [{transform_indices = @transform_0, window_bounds = array<i64: 8, 256>}, {transform_indices = @transform_1, window_bounds = array<i64: 8, 1>}]} {
    %c0_i32 = arith.constant 0 : i32
    %0 = arith.cmpi eq, %arg1, %c0_i32 : i32
    %1 = arith.extui %0 : i1 to i32
    %c0_i32_0 = arith.constant 0 : i32
    %2 = arith.cmpi ne, %1, %c0_i32_0 : i32
    scf.if %2 {
      %cst_8 = arith.constant 0.000000e+00 : f32
      %12 = vector.broadcast %cst_8 : f32 to vector<8x1xf32>
      %c0_9 = arith.constant 0 : index
      %c0_10 = arith.constant 0 : index
      %13 = vector.load %arg4[%c0_9, %c0_10] : memref<8x1xf32, #tpu.memory_space<vmem>>, vector<8x1xf32>
      tpu.vector_store %arg4[%c0_9, %c0_10], %12 {strides = array<i32>} : memref<8x1xf32, #tpu.memory_space<vmem>>, vector<8x1xf32>,
    } else {
    }
    %c0 = arith.constant 0 : index
    %c0_1 = arith.constant 0 : index
    %3 = vector.load %arg2[%c0, %c0_1] : memref<8x256xf32, #tpu.memory_space<vmem>>, vector<8x256xf32>
    %c0_2 = arith.constant 0 : index
    %c0_3 = arith.constant 0 : index
    %4 = vector.load %arg4[%c0_2, %c0_3] : memref<8x1xf32, #tpu.memory_space<vmem>>, vector<8x1xf32>
    %cst = arith.constant dense<0.000000e+00> : vector<8xf32>
    %5 = vector.multi_reduction <add>, %3, %cst [1] : vector<8x256xf32> to vector<8xf32>
    %6 = vector.shape_cast %5 : vector<8xf32> to vector<8x1xf32>
    %7 = arith.addf %4, %6 : vector<8x1xf32>
    %c0_4 = arith.constant 0 : index
    %c0_5 = arith.constant 0 : index
    %8 = vector.load %arg4[%c0_4, %c0_5] : memref<8x1xf32, #tpu.memory_space<vmem>>, vector<8x1xf32>
    tpu.vector_store %arg4[%c0_4, %c0_5], %7 {strides = array<i32>} : memref<8x1xf32, #tpu.memory_space<vmem>>, vector<8x1xf32>,
    %c0_i32_6 = arith.constant 0 : i32
    %9 = arith.cmpi eq, %arg1, %c0_i32_6 : i32
    %10 = arith.extui %9 : i1 to i32
    %c0_i32_7 = arith.constant 0 : i32
    %11 = arith.cmpi ne, %10, %c0_i32_7 : i32
    scf.if %11 {
      %c0_8 = arith.constant 0 : index
      %c0_9 = arith.constant 0 : index
      %12 = vector.load %arg4[%c0_8, %c0_9] : memref<8x1xf32, #tpu.memory_space<vmem>>, vector<8x1xf32>
      %cst_10 = arith.constant 3.906250e-03 : f32
      %13 = vector.broadcast %cst_10 : f32 to vector<8x1xf32>
      %14 = arith.mulf %12, %13 : vector<8x1xf32>
      %c0_11 = arith.constant 0 : index
      %c0_12 = arith.constant 0 : index
      %15 = vector.load %arg3[%c0_11, %c0_12] : memref<8x1xf32, #tpu.memory_space<vmem>>, vector<8x1xf32>
      tpu.vector_store %arg3[%c0_11, %c0_12], %14 {strides = array<i32>} : memref<8x1xf32, #tpu.memory_space<vmem>>, vector<8x1xf32>,
    } else {
    }
    return
  }
  func.func @transform_0(%arg0: i32, %arg1: i32) -> (i32, i32) {
    %c0_i32 = arith.constant 0 : i32
    return %arg0, %arg1 : i32, i32
  }
  func.func @transform_1(%arg0: i32, %arg1: i32) -> (i32, i32) {
    %c0_i32 = arith.constant 0 : i32
    %c0_i32_0 = arith.constant 0 : i32
    return %arg0, %c0_i32 : i32, i32
  }
}

</mosaic_0001>

<bundles_post_ra>
// kernel: feat_avg_pool.1
= control target key start
LH: loop header
LB: loop body
LE: loop exit
PB: predicated region body
PF: predicated region fallthrough
CT: control target
= control target key end

     0   :  { %vm12_vm0 = vcmask 7168   ;;  %v34_v2 = vmov 0.0   ;;  %s54_s0 = inlined_call_operand.vmem [shape: f32[8,256], index: 0, kind: input, shape index: {}]   ;;  %s55_s1 = inlined_call_operand.vmem [shape: f32[8,1], index: 1, kind: output, shape index: {}]  }
   0x1   :  { %v14_v0 = vld [vmem:[%s54_s0] sm:$0xff]  ;;  %v15_v1 = vld [vmem:[%s54_s0 + $0x8] sm:$0xff]  ;;  %13 = vst.msk [vmem:[#allocation2] sm:$0xff] %vm12_vm0, %v34_v2 }
   0x2   :  { %v17_v3 = vadd.f32 %v15_v1, %v14_v0 }
   0x4   :  { %18 = vadd.xlane.f32.xlu0 %v17_v3 }
   0x8   :  { %v16_v4 = vld [vmem:[#allocation2] sm:$0xff] }
  0x77   :  { %v19_v5 = vpop.xlane.xlu0 %18 }
  0x78   :  { %v20_v6 = vadd.f32 %v19_v5, %v16_v4 }
  0x7a   :  { %22 = vst.msk [vmem:[#allocation2] sm:$0xff] %vm12_vm0, %v20_v6 }
  0x81   :  { %v26_v7 = vld [vmem:[#allocation2] sm:$0xff] }
  0x82   :  { %v27_v8 = vmul.f32 0.00390625, %v26_v7 }
  0x84   :  { %28 = vst.msk [vmem:[%s55_s1] sm:$0xff] %vm12_vm0, %v27_v8 }

</bundles_post_ra>
